<compile_context>
chip_gen: v7x
topology: tpu7x:2x2x1
jax: 0.10.0
libtpu: 0.0.40
codegen_flags: <defaults>
</compile_context>

<pallas_src>
import functools

import jax
import jax.numpy as jnp
from jax import lax
from jax.experimental import pallas as pl
from jax.experimental.pallas import tpu as pltpu

DATA_DIM = 32
DIM = 64


def _mlp_kernel(x_ref, w1_ref, b1_ref, w2_ref, b2_ref, w3_ref, b3_ref,
                w4_ref, b4_ref, o_ref, *, compute_dtype, chunk_b, n_chunks):
    # x_ref: (TB, DATA_DIM) batch-major tile (f32 or bf16).
    # w1: (DIM, DATA_DIM), w2/w3: (DIM, DIM) in compute_dtype;
    # w4: (DIM, 1) f32; biases: (out, 1) f32.  o_ref: (1, TB) f32, lane-dense.
    w1 = w1_ref[...]
    b1 = b1_ref[...]
    w2 = w2_ref[...]
    b2 = b2_ref[...]
    w3 = w3_ref[...]
    b3 = b3_ref[...]
    w4 = w4_ref[...]
    b4 = b4_ref[...]

    # Contract both operands' last dim: (DIM, K) x (N, K) -> (DIM, N).
    # This is the standard "A @ B.T" MXU pattern; it lets X arrive batch-major
    # (no wrapper transpose) while keeping activations feature-major so the
    # final reduction emits a lane-dense (1, chunk) row.
    dn = (((1,), (1,)), ((), ()))

    # Static unroll over independent column chunks: gives the scheduler
    # independent MXU/VPU work to interleave and keeps the (DIM, chunk_b) f32
    # intermediates vreg-resident.
    for c in range(n_chunks):
        off = c * chunk_b
        xc = x_ref[pl.ds(off, chunk_b), :].astype(compute_dtype)

        # layer 1: Linear(DATA_DIM, DIM) + ReLU     -> (DIM, chunk_b), f32 acc
        h = lax.dot_general(w1, xc, dn, preferred_element_type=jnp.float32)
        h = jnp.maximum(h + b1, 0.0)
        # layer 2: Linear(DIM, DIM) + ReLU
        h = jnp.dot(w2, h.astype(compute_dtype),
                    preferred_element_type=jnp.float32)
        h = jnp.maximum(h + b2, 0.0)
        # layer 3: Linear(DIM, DIM) + ReLU
        h = jnp.dot(w3, h.astype(compute_dtype),
                    preferred_element_type=jnp.float32)
        h = jnp.maximum(h + b3, 0.0)
        # layer 4: Linear(DIM, 1) off the MXU: VPU multiply + sublane reduce,
        # producing a lane-dense (1, chunk_b) row.
        y = jnp.sum(h * w4, axis=0, keepdims=True) + b4
        o_ref[:, pl.ds(off, chunk_b)] = y.astype(o_ref.dtype)


def _round_up(n, m):
    return ((n + m - 1) // m) * m


def _cdiv(a, b):
    return -(-a // b)


def _choose_tiling(batch, tile_b, chunk_b):
    """Pick (tile, chunk, n_tiles): everything a multiple of 128, whole number
    of chunks per tile, last tile not mostly padding, and >=4 tiles for big
    batches so v7x's two TensorCores each get >=2 grid steps."""
    tile_b = max(128, _round_up(tile_b, 128))
    chunk_b = max(128, _round_up(chunk_b, 128))
    tb_cap = min(tile_b, _round_up(batch, 128))
    cb = min(chunk_b, tb_cap)
    tb_cap = _round_up(tb_cap, cb)
    n = _cdiv(batch, tb_cap)
    if n < 4 and batch > 4 * cb:
        n = min(4, _cdiv(batch, cb))
    tb = _round_up(_cdiv(batch, n), cb)
    n = _cdiv(batch, tb)
    return tb, cb, n


def discriminator_forward(x, params, *, tile_b=4096, chunk_b=512,
                          compute_dtype=jnp.bfloat16):
    """x: [B, DATA_DIM] float32 -> [B, 1] float32."""
    w1t, b1, w2t, b2, w3t, b3, w4, b4 = params
    B = x.shape[0]

    tb, cb, grid_b = _choose_tiling(B, tile_b, chunk_b)
    bp = grid_b * tb

    if bp != B:
        # Single fused pre-pass: pad the ragged batch; fold the bf16 cast into
        # it when the MXU path is bf16 (halves the kernel's X stream).  The
        # f32 path stays f32 end-to-end.
        xsrc = x.astype(jnp.bfloat16) if jnp.dtype(compute_dtype) == jnp.dtype(
            jnp.bfloat16) else x
        x_in = jnp.pad(xsrc, ((0, bp - B), (0, 0)))
    else:
        # Zero pre-pass; the compute-dtype cast happens per-chunk in-kernel.
        x_in = x

    w1c = w1t.astype(compute_dtype)
    w2c = w2t.astype(compute_dtype)
    w3c = w3t.astype(compute_dtype)

    # Weights/biases: full blocks with constant index_map -> DMA'd once,
    # VMEM-resident across all grid steps.
    resident = lambda a: pl.BlockSpec(a.shape, lambda i: (0, 0))

    out = pl.pallas_call(
        functools.partial(_mlp_kernel, compute_dtype=compute_dtype,
                          chunk_b=cb, n_chunks=tb // cb),
        out_shape=jax.ShapeDtypeStruct((1, bp), jnp.float32),
        grid=(grid_b,),
        in_specs=[
            # X tile streams batch-major; double-buffered by Pallas.
            pl.BlockSpec((tb, DATA_DIM), lambda i: (i, 0)),
            resident(w1c), resident(b1),
            resident(w2c), resident(b2),
            resident(w3c), resident(b3),
            resident(w4), resident(b4),
        ],
        out_specs=pl.BlockSpec((1, tb), lambda i: (0, i)),
        compiler_params=pltpu.CompilerParams(
            dimension_semantics=("parallel",)),
    )(x_in, w1c, b1, w2c, b2, w3c, b3, w4, b4)

    # (1, bp) -> (bp, 1) is a contiguity-preserving (free) reshape; the slice
    # is lazy under jit.  No extra HBM pass.
    return out.reshape(bp, 1)[:B]


def init_params(key, weight_init="he"):
    """Mirrors the PyTorch module: weights re-initialized by `initializer`
    ('he' = kaiming_uniform_(nonlinearity='relu'), 'glorot' = xavier_uniform_);
    biases keep nn.Linear's default U(-1/sqrt(fan_in), 1/sqrt(fan_in))."""
    layer_dims = [(DATA_DIM, DIM), (DIM, DIM), (DIM, DIM), (DIM, 1)]
    keys = jax.random.split(key, 2 * len(layer_dims))
    params = []
    for i, (fin, fout) in enumerate(layer_dims):
        wkey, bkey = keys[2 * i], keys[2 * i + 1]
        if weight_init == "he":
            wb = (6.0 / fin) ** 0.5            # kaiming_uniform_, relu gain
        elif weight_init == "glorot":
            wb = (6.0 / (fin + fout)) ** 0.5   # xavier_uniform_
        else:
            raise ValueError("UNKNOWN INITIALIZATION")
        # Layers 1-3 stored [out, in] (PyTorch nn.Linear layout, used directly
        # as the MXU LHS); layer 4 stored [in, 1] for the VPU multiply+reduce.
        wshape = (fout, fin) if fout > 1 else (fin, fout)
        w = jax.random.uniform(wkey, wshape, jnp.float32, -wb, wb)
        bb = 1.0 / (fin ** 0.5)                # nn.Linear default bias init
        b = jax.random.uniform(bkey, (fout, 1), jnp.float32, -bb, bb)
        params += [w, b]
    return tuple(params)


def _reference_forward(x, params, compute_dtype=jnp.float32):
    """Pure-JAX mirror of the kernel math (same operand dtypes, f32
    accumulation)."""
    w1t, b1, w2t, b2, w3t, b3, w4, b4 = params
    hi = lax.Precision.HIGHEST
    h = x.T                                        # (DATA_DIM, B) f32
    for wt, b in ((w1t, b1), (w2t, b2), (w3t, b3)):
        z = jnp.dot(wt.astype(compute_dtype), h.astype(compute_dtype),
                    preferred_element_type=jnp.float32, precision=hi)
        h = jnp.maximum(z + b, 0.0)                # f32
    y = jnp.sum(h * w4, axis=0, keepdims=True) + b4
    return y.T                                     # (B, 1)


if __name__ == "__main__":
    key = jax.random.PRNGKey(0)
    k_param, k_x1, k_x2 = jax.random.split(key, 3)
    params = init_params(k_param, weight_init="he")

    # 1) Small ragged batch, pure-f32 compute path (pads to one 128-wide tile).
    x_small = jax.random.normal(k_x1, (8, DATA_DIM), jnp.float32)
    out_small = jax.block_until_ready(
        discriminator_forward(x_small, params, compute_dtype=jnp.float32))
    ref_small = _reference_forward(x_small, params, compute_dtype=jnp.float32)
    assert out_small.shape == (8, 1)
    assert jnp.allclose(out_small, ref_small, atol=1e-3, rtol=1e-3)

    # 2) Multi-tile grid (3 steps of 256, 2 chunks of 128 each) + padding,
    #    bf16 MXU operands / f32 accumulation.
    x_big = jax.random.normal(k_x2, (640, DATA_DIM), jnp.float32)
    out_big = jax.block_until_ready(
        discriminator_forward(x_big, params, tile_b=256, chunk_b=128,
                              compute_dtype=jnp.bfloat16))
    ref_big = _reference_forward(x_big, params, compute_dtype=jnp.bfloat16)
    assert out_big.shape == (640, 1)
    assert jnp.allclose(out_big, ref_big, atol=2e-3, rtol=2e-3)

    print("KERNEL_OK")
</pallas_src>

<mosaic_0001>
module attributes {stable_mosaic.version = 11 : i64} {
  func.func @_mlp_kernel(%arg0: i32, %arg1: memref<128x32xf32, #tpu.memory_space<vmem>>, %arg2: memref<64x32xf32, #tpu.memory_space<vmem>>, %arg3: memref<64x1xf32, #tpu.memory_space<vmem>>, %arg4: memref<64x64xf32, #tpu.memory_space<vmem>>, %arg5: memref<64x1xf32, #tpu.memory_space<vmem>>, %arg6: memref<64x64xf32, #tpu.memory_space<vmem>>, %arg7: memref<64x1xf32, #tpu.memory_space<vmem>>, %arg8: memref<64x1xf32, #tpu.memory_space<vmem>>, %arg9: memref<1x1xf32, #tpu.memory_space<vmem>>, %arg10: memref<1x128xf32, #tpu.memory_space<vmem>>) attributes {dimension_semantics = [#tpu.dimension_semantics<parallel>], iteration_bounds = array<i64: 1>, scalar_prefetch = 0 : i64, scratch_operands = 0 : i64, tpu.core_type = #tpu.core_type<tc>, window_params = [{transform_indices = @transform_0, window_bounds = array<i64: 128, 32>}, {pipeline_mode = #tpu.pipeline_mode<synchronous>, transform_indices = @transform_1, window_bounds = array<i64: 64, 32>}, {pipeline_mode = #tpu.pipeline_mode<synchronous>, transform_indices = @transform_2, window_bounds = array<i64: 64, 1>}, {pipeline_mode = #tpu.pipeline_mode<synchronous>, transform_indices = @transform_3, window_bounds = array<i64: 64, 64>}, {pipeline_mode = #tpu.pipeline_mode<synchronous>, transform_indices = @transform_4, window_bounds = array<i64: 64, 1>}, {pipeline_mode = #tpu.pipeline_mode<synchronous>, transform_indices = @transform_5, window_bounds = array<i64: 64, 64>}, {pipeline_mode = #tpu.pipeline_mode<synchronous>, transform_indices = @transform_6, window_bounds = array<i64: 64, 1>}, {pipeline_mode = #tpu.pipeline_mode<synchronous>, transform_indices = @transform_7, window_bounds = array<i64: 64, 1>}, {pipeline_mode = #tpu.pipeline_mode<synchronous>, transform_indices = @transform_8, window_bounds = array<i64: 1, 1>}, {transform_indices = @transform_9, window_bounds = array<i64: 1, 128>}]} {
    %c0 = arith.constant 0 : index
    %c0_0 = arith.constant 0 : index
    %0 = vector.load %arg2[%c0, %c0_0] : memref<64x32xf32, #tpu.memory_space<vmem>>, vector<64x32xf32>
    %c0_1 = arith.constant 0 : index
    %c0_2 = arith.constant 0 : index
    %1 = vector.load %arg3[%c0_1, %c0_2] : memref<64x1xf32, #tpu.memory_space<vmem>>, vector<64x1xf32>
    %c0_3 = arith.constant 0 : index
    %c0_4 = arith.constant 0 : index
    %2 = vector.load %arg4[%c0_3, %c0_4] : memref<64x64xf32, #tpu.memory_space<vmem>>, vector<64x64xf32>
    %c0_5 = arith.constant 0 : index
    %c0_6 = arith.constant 0 : index
    %3 = vector.load %arg5[%c0_5, %c0_6] : memref<64x1xf32, #tpu.memory_space<vmem>>, vector<64x1xf32>
    %c0_7 = arith.constant 0 : index
    %c0_8 = arith.constant 0 : index
    %4 = vector.load %arg6[%c0_7, %c0_8] : memref<64x64xf32, #tpu.memory_space<vmem>>, vector<64x64xf32>
    %c0_9 = arith.constant 0 : index
    %c0_10 = arith.constant 0 : index
    %5 = vector.load %arg7[%c0_9, %c0_10] : memref<64x1xf32, #tpu.memory_space<vmem>>, vector<64x1xf32>
    %c0_11 = arith.constant 0 : index
    %c0_12 = arith.constant 0 : index
    %6 = vector.load %arg8[%c0_11, %c0_12] : memref<64x1xf32, #tpu.memory_space<vmem>>, vector<64x1xf32>
    %c0_13 = arith.constant 0 : index
    %c0_14 = arith.constant 0 : index
    %7 = vector.load %arg9[%c0_13, %c0_14] : memref<1x1xf32, #tpu.memory_space<vmem>>, vector<1x1xf32>
    %c0_15 = arith.constant 0 : index
    %c0_16 = arith.constant 0 : index
    %8 = vector.load %arg1[%c0_15, %c0_16] : memref<128x32xf32, #tpu.memory_space<vmem>>, vector<128x32xf32>
    %cst = arith.constant dense<0.000000e+00> : vector<64x128xf32>
    %9 = tpu.matmul %0, %8, %cst {dimension_numbers = #tpu.dot_dimension_numbers<[1], [1], [0], [0], [0, 0, 1, 0], [], []>} : vector<64x32xf32>, vector<128x32xf32>, vector<64x128xf32> -> vector<64x128xf32>
    %10 = vector.broadcast %1 : vector<64x1xf32> to vector<64x128xf32>
    %11 = arith.addf %9, %10 : vector<64x128xf32>
    %cst_17 = arith.constant 0.000000e+00 : f32
    %12 = vector.broadcast %cst_17 : f32 to vector<64x128xf32>
    %13 = arith.maximumf %11, %12 : vector<64x128xf32>
    %cst_18 = arith.constant dense<0.000000e+00> : vector<64x128xf32>
    %14 = tpu.matmul %2, %13, %cst_18 {dimension_numbers = #tpu.dot_dimension_numbers<[1], [0], [0], [1], [0, 0, 1, 1], [], []>} : vector<64x64xf32>, vector<64x128xf32>, vector<64x128xf32> -> vector<64x128xf32>
    %15 = vector.broadcast %3 : vector<64x1xf32> to vector<64x128xf32>
    %16 = arith.addf %14, %15 : vector<64x128xf32>
    %cst_19 = arith.constant 0.000000e+00 : f32
    %17 = vector.broadcast %cst_19 : f32 to vector<64x128xf32>
    %18 = arith.maximumf %16, %17 : vector<64x128xf32>
    %cst_20 = arith.constant dense<0.000000e+00> : vector<64x128xf32>
    %19 = tpu.matmul %4, %18, %cst_20 {dimension_numbers = #tpu.dot_dimension_numbers<[1], [0], [0], [1], [0, 0, 1, 1], [], []>} : vector<64x64xf32>, vector<64x128xf32>, vector<64x128xf32> -> vector<64x128xf32>
    %20 = vector.broadcast %5 : vector<64x1xf32> to vector<64x128xf32>
    %21 = arith.addf %19, %20 : vector<64x128xf32>
    %cst_21 = arith.constant 0.000000e+00 : f32
    %22 = vector.broadcast %cst_21 : f32 to vector<64x128xf32>
    %23 = arith.maximumf %21, %22 : vector<64x128xf32>
    %24 = vector.broadcast %6 : vector<64x1xf32> to vector<64x128xf32>
    %25 = arith.mulf %23, %24 : vector<64x128xf32>
    %cst_22 = arith.constant dense<0.000000e+00> : vector<128xf32>
    %26 = vector.multi_reduction <add>, %25, %cst_22 [0] : vector<64x128xf32> to vector<128xf32>
    %27 = vector.shape_cast %26 : vector<128xf32> to vector<1x128xf32>
    %28 = vector.broadcast %7 : vector<1x1xf32> to vector<1x128xf32>
    %29 = arith.addf %27, %28 : vector<1x128xf32>
    %c0_23 = arith.constant 0 : index
    %c0_24 = arith.constant 0 : index
    %30 = vector.load %arg10[%c0_23, %c0_24] : memref<1x128xf32, #tpu.memory_space<vmem>>, vector<1x128xf32>
    tpu.vector_store %arg10[%c0_23, %c0_24], %29 {strides = array<i32>} : memref<1x128xf32, #tpu.memory_space<vmem>>, vector<1x128xf32>,
    return
  }
  func.func @transform_0(%arg0: i32) -> (i32, i32) {
    %c0_i32 = arith.constant 0 : i32
    %c0_i32_0 = arith.constant 0 : i32
    return %arg0, %c0_i32 : i32, i32
  }
  func.func @transform_1(%arg0: i32) -> (i32, i32) {
    %c0_i32 = arith.constant 0 : i32
    %c0_i32_0 = arith.constant 0 : i32
    %c0_i32_1 = arith.constant 0 : i32
    return %c0_i32, %c0_i32_0 : i32, i32
  }
  func.func @transform_2(%arg0: i32) -> (i32, i32) {
    %c0_i32 = arith.constant 0 : i32
    %c0_i32_0 = arith.constant 0 : i32
    %c0_i32_1 = arith.constant 0 : i32
    return %c0_i32, %c0_i32_0 : i32, i32
  }
  func.func @transform_3(%arg0: i32) -> (i32, i32) {
    %c0_i32 = arith.constant 0 : i32
    %c0_i32_0 = arith.constant 0 : i32
    %c0_i32_1 = arith.constant 0 : i32
    return %c0_i32, %c0_i32_0 : i32, i32
  }
  func.func @transform_4(%arg0: i32) -> (i32, i32) {
    %c0_i32 = arith.constant 0 : i32
    %c0_i32_0 = arith.constant 0 : i32
    %c0_i32_1 = arith.constant 0 : i32
    return %c0_i32, %c0_i32_0 : i32, i32
  }
  func.func @transform_5(%arg0: i32) -> (i32, i32) {
    %c0_i32 = arith.constant 0 : i32
    %c0_i32_0 = arith.constant 0 : i32
    %c0_i32_1 = arith.constant 0 : i32
    return %c0_i32, %c0_i32_0 : i32, i32
  }
  func.func @transform_6(%arg0: i32) -> (i32, i32) {
    %c0_i32 = arith.constant 0 : i32
    %c0_i32_0 = arith.constant 0 : i32
    %c0_i32_1 = arith.constant 0 : i32
    return %c0_i32, %c0_i32_0 : i32, i32
  }
  func.func @transform_7(%arg0: i32) -> (i32, i32) {
    %c0_i32 = arith.constant 0 : i32
    %c0_i32_0 = arith.constant 0 : i32
    %c0_i32_1 = arith.constant 0 : i32
    return %c0_i32, %c0_i32_0 : i32, i32
  }
  func.func @transform_8(%arg0: i32) -> (i32, i32) {
    %c0_i32 = arith.constant 0 : i32
    %c0_i32_0 = arith.constant 0 : i32
    %c0_i32_1 = arith.constant 0 : i32
    return %c0_i32, %c0_i32_0 : i32, i32
  }
  func.func @transform_9(%arg0: i32) -> (i32, i32) {
    %c0_i32 = arith.constant 0 : i32
    %c0_i32_0 = arith.constant 0 : i32
    return %c0_i32, %arg0 : i32, i32
  }
}

</mosaic_0001>

<bundles_post_ra>
// kernel: tpu_custom_call.1
= control target key start
LH: loop header
LB: loop body
LE: loop exit
PB: predicated region body
PF: predicated region fallthrough
CT: control target
= control target key end

     0   :  { %s1424_s0 = inlined_call_operand.vmem [shape: f32[128,32], index: 0, kind: input, shape index: {}]   ;;  %s1425_s1 = inlined_call_operand.vmem [shape: f32[64,32], index: 1, kind: input, shape index: {}]   ;;  %s1426_s2 = inlined_call_operand.vmem [shape: f32[64,1], index: 2, kind: input, shape index: {}]   ;;  %s1427_s3 = inlined_call_operand.vmem [shape: f32[64,64], index: 3, kind: input, shape index: {}]   ;;  %s1428_s4 = inlined_call_operand.vmem [shape: f32[64,1], index: 4, kind: input, shape index: {}]   ;;  %s1429_s5 = inlined_call_operand.vmem [shape: f32[64,64], index: 5, kind: input, shape index: {}]   ;;  %s1430_s6 = inlined_call_operand.vmem [shape: f32[64,1], index: 6, kind: input, shape index: {}]   ;;  %s1431_s7 = inlined_call_operand.vmem [shape: f32[64,1], index: 7, kind: input, shape index: {}]   ;;  %s1432_s8 = inlined_call_operand.<no memory space> [shape: f32[1,1], index: 8, kind: input, shape index: {}]   ;;  %s1433_s9 = inlined_call_operand.hbm [shape: f32[1,128], index: 9, kind: output, shape index: {}]  }
   0x1   :  { %v14_v0 = vstv %s1432_s8 }
   0x2   :  { %15 = vst [vmem:[#allocation2] sm:$0x1] %v14_v0 }
   0x3   :  { %v92_v1 = vld [vmem:[%s1424_s0] sm:$0xff]  ;;  %v93_v2 = vld [vmem:[%s1424_s0 + $0x8] sm:$0xff]  ;;  %vm148_vm0 = vcmask 261120   ;;  %v94_v3 = vld [vmem:[%s1424_s0 + $0x10] sm:$0xff]  ;;  %v1079_v7 = vmov 0  }
   0x4   :  { %v971_v4 = vpack.c.bf16 %v93_v2, %v92_v1  ;;  %vm1145_vm1 = vmpackc.low %vm148_vm0, %vm148_vm0  ;;  %v95_v6 = vld [vmem:[%s1424_s0 + $0x18] sm:$0xff]  ;;  %1053 = vset.pattern.permute.xlu0 %v1079_v7  ;;  %1054 = vset.pattern.permute.xlu1 %v1079_v7  ;;  %v35_v9 = vld [vmem:[%s1425_s1] sm:$0xff] }
   0x5   :  { %v977_v8 = vpack.c.bf16 %v95_v6, %v94_v3  ;;  %v96_v10 = vld [vmem:[%s1424_s0 + $0x20] sm:$0xff]  ;;  %v97_v11 = vld [vmem:[%s1424_s0 + $0x28] sm:$0xff]  ;;  %903 = vmatprep.mubr.msk.f32.mxu0 %vm148_vm0, %v35_v9  ;;  %v45_v14 = vld [vmem:[%s1426_s2 + $0x10] sm:$0xff] }
   0x6   :  { %973 = vmatprep.subr.msk.bf16.mxu0 %vm1145_vm1, %v971_v4  ;;  %v43_v12 = vld [vmem:[%s1426_s2] sm:$0xff]  ;;  %v983_v13 = vpack.c.bf16 %v97_v11, %v96_v10  ;;  %v44_v15 = vld [vmem:[%s1426_s2 + $0x8] sm:$0xff]  ;;  %120 = vperm.xlu1 %1054, %v45_v14   ;;  %v46_v16 = vld [vmem:[%s1426_s2 + $0x18] sm:$0xff] }
   0x7   :  { %976 = vmatpush3.bf16.xpose.msk.msra.mxu0 %vm1145_vm1, %v971_v4  ;;  %110 = vperm.xlu0 %1053, %v43_v12   ;;  %v98_v17 = vld [vmem:[%s1424_s0 + $0x30] sm:$0xff]  ;;  %v99_v18 = vld [vmem:[%s1424_s0 + $0x38] sm:$0xff]  ;;  %v47_v19 = vld [vmem:[%s1426_s2 + $0x20] sm:$0xff] }
   0x8   :  { %979 = vmatprep.subr.msk.bf16.mxu0 %vm1145_vm1, %v977_v8  ;;  %v48_v20 = vld [vmem:[%s1426_s2 + $0x28] sm:$0xff]  ;;  %v989_v21 = vpack.c.bf16 %v99_v18, %v98_v17  ;;  %v49_v22 = vld [vmem:[%s1426_s2 + $0x30] sm:$0xff]  ;;  %v50_v23 = vld [vmem:[%s1426_s2 + $0x38] sm:$0xff] }
   0xa   :  { %125 = vperm.xlu1 %1054, %v46_v16  }
   0xb   :  { %115 = vperm.xlu0 %1053, %v44_v15  }
   0xe   :  { %135 = vperm.xlu1 %1054, %v48_v20  }
   0xf   :  { %982 = vmatpush3.bf16.xpose.msk.msra.mxu0 %vm1145_vm1, %v977_v8  ;;  %130 = vperm.xlu0 %1053, %v47_v19  }
  0x10   :  { %985 = vmatprep.subr.msk.bf16.mxu0 %vm1145_vm1, %v983_v13 }
  0x11   :  { %16 = vsyncpa [#allocation4], 0  ;;  %v100_v24 = vld [vmem:[%s1424_s0 + $0x40] sm:$0xff]  ;;  %v101_v25 = vld [vmem:[%s1424_s0 + $0x48] sm:$0xff]  ;;  %vm374_vm2 = vcmask 523264  }
  0x12   :  { %v59_v26 = vld [vmem:[%s1428_s4] sm:$0xff]  ;;  %145 = vperm.xlu1 %1054, %v50_v23   ;;  %v60_v27 = vld [vmem:[%s1428_s4 + $0x8] sm:$0xff]  ;;  %v995_v28 = vpack.c.bf16 %v101_v25, %v100_v24  ;;  %v61_v29 = vld [vmem:[%s1428_s4 + $0x10] sm:$0xff] }
  0x13   :  { %140 = vperm.xlu0 %1053, %v49_v22   ;;  %v62_v30 = vld [vmem:[%s1428_s4 + $0x18] sm:$0xff]  ;;  %v102_v31 = vld [vmem:[%s1424_s0 + $0x50] sm:$0xff]  ;;  %v63_v33 = vld [vmem:[%s1428_s4 + $0x20] sm:$0xff] }
  0x14   :  { %v103_v32 = vld [vmem:[%s1424_s0 + $0x58] sm:$0xff]  ;;  %v64_v34 = vld [vmem:[%s1428_s4 + $0x28] sm:$0xff]  ;;  %v65_v36 = vld [vmem:[%s1428_s4 + $0x30] sm:$0xff] }
  0x15   :  { %v1001_v35 = vpack.c.bf16 %v103_v32, %v102_v31  ;;  %v66_v37 = vld [vmem:[%s1428_s4 + $0x38] sm:$0xff]  ;;  %v104_v38 = vld [vmem:[%s1424_s0 + $0x60] sm:$0xff]  ;;  %v105_v39 = vld [vmem:[%s1424_s0 + $0x68] sm:$0xff] }
  0x16   :  { %341 = vperm.xlu1 %1054, %v60_v27   ;;  %v75_v40 = vld [vmem:[%s1430_s6] sm:$0xff]  ;;  %v76_v41 = vld [vmem:[%s1430_s6 + $0x8] sm:$0xff]  ;;  %v1007_v42 = vpack.c.bf16 %v105_v39, %v104_v38  ;;  %v77_v43 = vld [vmem:[%s1430_s6 + $0x10] sm:$0xff] }
  0x17   :  { %988 = vmatpush3.bf16.xpose.msk.msra.mxu0 %vm1145_vm1, %v983_v13  ;;  %336 = vperm.xlu0 %1053, %v59_v26   ;;  %v78_v44 = vld [vmem:[%s1430_s6 + $0x18] sm:$0xff]  ;;  %v106_v45 = vld [vmem:[%s1424_s0 + $0x70] sm:$0xff]  ;;  %v83_v47 = vld [vmem:[%s1431_s7] sm:$0xff] }
  0x18   :  { %991 = vmatprep.subr.msk.bf16.mxu0 %vm1145_vm1, %v989_v21  ;;  %v107_v46 = vld [vmem:[%s1424_s0 + $0x78] sm:$0xff]  ;;  %v84_v48 = vld [vmem:[%s1431_s7 + $0x8] sm:$0xff]  ;;  %v79_v50 = vld [vmem:[%s1430_s6 + $0x20] sm:$0xff] }
  0x19   :  { %v1013_v49 = vpack.c.bf16 %v107_v46, %v106_v45  ;;  %v85_v51 = vld [vmem:[%s1431_s7 + $0x10] sm:$0xff]  ;;  %v80_v52 = vld [vmem:[%s1430_s6 + $0x28] sm:$0xff]  ;;  %v86_v53 = vld [vmem:[%s1431_s7 + $0x18] sm:$0xff] }
  0x1a   :  { %351 = vperm.xlu1 %1054, %v62_v30   ;;  %v81_v54 = vld [vmem:[%s1430_s6 + $0x30] sm:$0xff]  ;;  %v87_v55 = vld [vmem:[%s1431_s7 + $0x20] sm:$0xff]  ;;  %v82_v56 = vld [vmem:[%s1430_s6 + $0x38] sm:$0xff] }
  0x1b   :  { %346 = vperm.xlu0 %1053, %v61_v29   ;;  %v88_v57 = vld [vmem:[%s1431_s7 + $0x28] sm:$0xff]  ;;  %v37_v59 = vld [vmem:[%s1425_s1 + $0x10] sm:$0xff]  ;;  %v90_v61 = vld [vmem:[%s1431_s7 + $0x38] sm:$0xff] }
  0x1c   :  { %v36_v58 = vld [vmem:[%s1425_s1 + $0x8] sm:$0xff]  ;;  %v89_v60 = vld [vmem:[%s1431_s7 + $0x30] sm:$0xff]  ;;  %v38_v62 = vld [vmem:[%s1425_s1 + $0x18] sm:$0xff] }
  0x1d   :  { %v39_v63 = vld [vmem:[%s1425_s1 + $0x20] sm:$0xff]  ;;  %v40_v1 = vld [vmem:[%s1425_s1 + $0x28] sm:$0xff]  ;;  %v41_v2 = vld [vmem:[%s1425_s1 + $0x30] sm:$0xff] }
  0x1e   :  { %361 = vperm.xlu1 %1054, %v64_v34   ;;  %v91_v0 = vld [vmem:[#allocation2] sm:$0x1]  ;;  %v42_v3 = vld [vmem:[%s1425_s1 + $0x38] sm:$0xff]  ;;  %v56_v45 = vld [vmem:[%s1427_s3 + $0x28] sm:$0xff] }
  0x1f   :  { %994 = vmatpush3.bf16.xpose.msk.msra.mxu0 %vm1145_vm1, %v989_v21  ;;  %356 = vperm.xlu0 %1053, %v63_v33   ;;  %v51_v4 = vld [vmem:[%s1427_s3] sm:$0xff]  ;;  %v57_v46 = vld [vmem:[%s1427_s3 + $0x30] sm:$0xff] }
  0x20   :  { %997 = vmatprep.subr.msk.bf16.mxu0 %vm1145_vm1, %v995_v28  ;;  %931 = vmatprep.mubr.msk.f32.mxu1 %vm374_vm2, %v51_v4 }
  0x22   :  { %371 = vperm.xlu1 %1054, %v66_v37  }
  0x23   :  { %366 = vperm.xlu0 %1053, %v65_v36  }
  0x26   :  { %519 = vperm.xlu1 %1054, %v76_v41   ;;  %v52_v41 = vld [vmem:[%s1427_s3 + $0x8] sm:$0xff] }
  0x27   :  { %1000 = vmatpush3.bf16.xpose.msk.msra.mxu0 %vm1145_vm1, %v995_v28  ;;  %514 = vperm.xlu0 %1053, %v75_v40  }
  0x28   :  { %1003 = vmatprep.subr.msk.bf16.mxu0 %vm1145_vm1, %v1001_v35 }
  0x2a   :  { %529 = vperm.xlu1 %1054, %v78_v44   ;;  %v55_v44 = vld [vmem:[%s1427_s3 + $0x20] sm:$0xff] }
  0x2b   :  { %524 = vperm.xlu0 %1053, %v77_v43   ;;  %v54_v43 = vld [vmem:[%s1427_s3 + $0x18] sm:$0xff] }
  0x2e   :  { %696 = vperm.xlu1 %1054, %v84_v48   ;;  %v67_v48 = vld [vmem:[%s1429_s5] sm:$0xff] }
  0x2f   :  { %1006 = vmatpush3.bf16.xpose.msk.msra.mxu0 %vm1145_vm1, %v1001_v35  ;;  %691 = vperm.xlu0 %1053, %v83_v47   ;;  %v58_v47 = vld [vmem:[%s1427_s3 + $0x38] sm:$0xff] }
  0x30   :  { %1009 = vmatprep.subr.msk.bf16.mxu0 %vm1145_vm1, %v1007_v42 }
  0x32   :  { %701 = vperm.xlu1 %1054, %v85_v51  }
  0x33   :  { %534 = vperm.xlu0 %1053, %v79_v50  }
  0x36   :  { %706 = vperm.xlu1 %1054, %v86_v53  }
  0x37   :  { %1012 = vmatpush3.bf16.xpose.msk.msra.mxu0 %vm1145_vm1, %v1007_v42  ;;  %539 = vperm.xlu0 %1053, %v80_v52   ;;  %v53_v42 = vld [vmem:[%s1427_s3 + $0x10] sm:$0xff] }
  0x38   :  { %1015 = vmatprep.subr.msk.bf16.mxu0 %vm1145_vm1, %v1013_v49 }
  0x3a   :  { %711 = vperm.xlu1 %1054, %v87_v55  }
  0x3b   :  { %544 = vperm.xlu0 %1053, %v81_v54  }
  0x3e   :  { %716 = vperm.xlu1 %1054, %v88_v57  }
  0x3f   :  { %1018 = vmatpush3.bf16.xpose.msk.msra.mxu0 %vm1145_vm1, %v1013_v49  ;;  %549 = vperm.xlu0 %1053, %v82_v56  }
  0x42   :  { %726 = vperm.xlu1 %1054, %v90_v61  }
  0x43   :  { %721 = vperm.xlu0 %1053, %v89_v60  }
  0x46   :  { %904 = vmatmul.mubr.msk.f32.vlgmr.msra.gmra.mrb[0].mxu0 %vm148_vm0, %v36_v58 }
  0x47   :  { %906 = vmatprep.mubr.msk.f32.mxu0 %vm148_vm0, %v37_v59  ;;  %752 = vperm.xlu0 %1053, %v91_v0  }
  0x4a   :  { %907 = vmatmul.mubr.msk.f32.gmra.mrb[2].mxu0 %vm148_vm0, %v38_v62 }
  0x4b   :  { %909 = vmatprep.mubr.msk.f32.mxu0 %vm148_vm0, %v39_v63 }
  0x4e   :  { %910 = vmatmul.mubr.msk.f32.gmra.mrb[4].mxu0 %vm148_vm0, %v40_v1 }
  0x4f   :  { %912 = vmatprep.mubr.msk.f32.mxu0 %vm148_vm0, %v41_v2 }
  0x52   :  { %913 = vmatmul.mubr.msk.f32.gmra.mrb[6].mxu0 %vm148_vm0, %v42_v3 }
  0x85   :  { %v121_v6 = vpop.permute.xlu1 %120 }
  0x86   :  { %v111_v5 = vpop.permute.xlu0 %110 }
  0x89   :  { %v126_v8 = vpop.permute.xlu1 %125 }
  0x8a   :  { %v116_v7 = vpop.permute.xlu0 %115 }
  0x8d   :  { %v136_v18 = vpop.permute.xlu1 %135 }
  0x8e   :  { %v131_v21 = vpop.permute.xlu0 %130 }
  0x91   :  { %v146_v30 = vpop.permute.xlu1 %145 }
  0x92   :  { %v141_v33 = vpop.permute.xlu0 %140 }
  0x95   :  { %v342_v49 = vpop.permute.xlu1 %341 }
  0x96   :  { %v337_v50 = vpop.permute.xlu0 %336 }
  0x99   :  { %v352_v51 = vpop.permute.xlu1 %351 }
  0x9a   :  { %v347_v53 = vpop.permute.xlu0 %346 }
  0x9d   :  { %v362_v62 = vpop.permute.xlu1 %361 }
  0x9e   :  { %v357_v1 = vpop.permute.xlu0 %356 }
 0x119   :  { %v905_v9 = vpop.f32.mrb[0].mxu0 }
 0x11a   :  { %v293_v10 = vadd.f32 %v905_v9, %v116_v7  ;;  %v287_v11 = vpop.f32.mrb[1].mxu0 }
 0x11b   :  { %v288_v12 = vadd.f32 %v287_v11, %v111_v5 }
 0x11c   :  { %v327_v13 = vmax.f32 %v293_v10, 0.0  ;;  %v372_v10 = vpop.permute.xlu1 %371 }
 0x11d   :  { %v326_v14 = vmax.f32 %v288_v12, 0.0  ;;  %v908_v15 = vpop.f32.mrb[2].mxu0 }
 0x11e   :  { %v303_v16 = vadd.f32 %v908_v15, %v126_v8  ;;  %v297_v17 = vpop.f32.mrb[3].mxu0 }
 0x11f   :  { %v298_v19 = vadd.f32 %v297_v17, %v121_v6  ;;  %v1019_v20 = vpack.c.bf16 %v327_v13, %v326_v14  ;;  %v367_v13 = vpop.permute.xlu0 %366 }
 0x120   :  { %v329_v22 = vmax.f32 %v303_v16, 0.0 }
 0x121   :  { %v328_v23 = vmax.f32 %v298_v19, 0.0  ;;  %v911_v24 = vpop.f32.mrb[4].mxu0  ;;  %1020 = vmatprep.subr.bf16.mxu1 %v1019_v20 }
 0x122   :  { %v313_v25 = vadd.f32 %v911_v24, %v136_v18  ;;  %v307_v26 = vpop.f32.mrb[5].mxu0  ;;  %1022 = vmatpush3.bf16.msra.mxu1 %v1019_v20  ;;  %v71_v24 = vld [vmem:[%s1429_s5 + $0x20] sm:$0xff] }
 0x123   :  { %v1023_v27 = vpack.c.bf16 %v329_v22, %v328_v23  ;;  %v308_v28 = vadd.f32 %v307_v26, %v131_v21  ;;  %v68_v21 = vld [vmem:[%s1429_s5 + $0x8] sm:$0xff]  ;;  %v69_v22 = vld [vmem:[%s1429_s5 + $0x10] sm:$0xff]  ;;  %v70_v23 = vld [vmem:[%s1429_s5 + $0x18] sm:$0xff] }
 0x124   :  { %v331_v29 = vmax.f32 %v313_v25, 0.0  ;;  %v72_v25 = vld [vmem:[%s1429_s5 + $0x28] sm:$0xff]  ;;  %v73_v26 = vld [vmem:[%s1429_s5 + $0x30] sm:$0xff] }
 0x125   :  { %v330_v31 = vmax.f32 %v308_v28, 0.0  ;;  %v914_v32 = vpop.f32.mrb[6].mxu0  ;;  %1024 = vmatprep.subr.bf16.mxu1 %v1023_v27  ;;  %v515_v28 = vpop.permute.xlu0 %514 }
 0x126   :  { %v323_v34 = vadd.f32 %v914_v32, %v146_v30  ;;  %v317_v35 = vpop.f32.mrb[7].mxu0  ;;  %1026 = vmatpush3.bf16.msra.mxu1 %v1023_v27  ;;  %v74_v27 = vld [vmem:[%s1429_s5 + $0x38] sm:$0xff]  ;;  %s1080_s5 = smov [#allocation3]  }
 0x127   :  { %v1027_v36 = vpack.c.bf16 %v331_v29, %v330_v31  ;;  %v318_v37 = vadd.f32 %v317_v35, %v141_v33  ;;  %v520_v29 = vpop.permute.xlu1 %519  ;;  %s767_s27 = sshll.u32 %s1080_s5, 4  ;;  %s768_s27 = int_to_ptr.vmem [resolvable:$true] %s767_s27 }
 0x128   :  { %v333_v38 = vmax.f32 %v323_v34, 0.0  ;;  %s1055_s2 = scalar_lea.vmem %s768_s27, 16  ;;  %s1059_s4 = scalar_lea.vmem %s768_s27, 32 }
 0x129   :  { %v332_v39 = vmax.f32 %v318_v37, 0.0  ;;  %1028 = vmatprep.subr.bf16.mxu1 %v1027_v36  ;;  %v525_v30 = vpop.permute.xlu0 %524  ;;  %p1056_p0 = scmp.ne.s32.totalorder %s768_s27, %s1055_s2  ;;  %p1060_p1 = scmp.lt.s32.totalorder %s768_s27, %s768_s27 }
 0x12a   :  { %1030 = vmatpush3.bf16.msra.mxu1 %v1027_v36  ;;  %p1061_p2 = scmp.lt.s32.totalorder %s1059_s4, %s1055_s2 }
 0x12b   :  { %v1031_v40 = vpack.c.bf16 %v333_v38, %v332_v39  ;;  %v530_v31 = vpop.permute.xlu1 %529 }
 0x12c   :  { %p1062_p3 = por %p1061_p2, %p1060_p1 }
 0x12d   :  { %1032 = vmatprep.subr.bf16.mxu1 %v1031_v40  ;;  %v692_v32 = vpop.permute.xlu0 %691 }
 0x12e   :  { %1034 = vmatpush3.bf16.msra.mxu1 %v1031_v40  ;;  %p1063_p4 = pnand %p1062_p3, %p1056_p0 }
 0x12f   :  { %v697_v33 = vpop.permute.xlu1 %696 }
 0x131   :  { %932 = vmatmul.mubr.msk.f32.vlgmr.msra.gmra.mrb[0].mxu1 %vm374_vm2, %v52_v41  ;;  %v535_v34 = vpop.permute.xlu0 %534 }
 0x132   :  { %934 = vmatprep.mubr.msk.f32.mxu1 %vm374_vm2, %v53_v42 }
 0x133   :  { %v702_v35 = vpop.permute.xlu1 %701 }
 0x135   :  { %935 = vmatmul.mubr.msk.f32.gmra.mrb[2].mxu1 %vm374_vm2, %v54_v43  ;;  %v540_v36 = vpop.permute.xlu0 %539 }
 0x136   :  { %937 = vmatprep.mubr.msk.f32.mxu1 %vm374_vm2, %v55_v44 }
 0x137   :  { %v707_v38 = vpop.permute.xlu1 %706 }
 0x139   :  { %938 = vmatmul.mubr.msk.f32.gmra.mrb[4].mxu1 %vm374_vm2, %v56_v45  ;;  %v545_v45 = vpop.permute.xlu0 %544 }
 0x13a   :  { %940 = vmatprep.mubr.msk.f32.mxu1 %vm374_vm2, %v57_v46 }
 0x13d   :  { %941 = vmatmul.mubr.msk.f32.gmra.mrb[6].mxu1 %vm374_vm2, %v58_v47 }
 0x13e   :  { %959 = vmatprep.mubr.msk.f32.mxu1 %vm374_vm2, %v67_v48 }
 0x204   :  { %v933_v52 = vpop.f32.mrb[0].mxu1 }
 0x205   :  { %v471_v54 = vadd.f32 %v933_v52, %v342_v49  ;;  %v465_v55 = vpop.f32.mrb[1].mxu1 }
 0x206   :  { %v466_v56 = vadd.f32 %v465_v55, %v337_v50 }
 0x207   :  { %v505_v57 = vmax.f32 %v471_v54, 0.0 }
 0x208   :  { %v504_v58 = vmax.f32 %v466_v56, 0.0  ;;  %v936_v59 = vpop.f32.mrb[2].mxu1 }
 0x209   :  { %v481_v60 = vadd.f32 %v936_v59, %v352_v51  ;;  %v475_v61 = vpop.f32.mrb[3].mxu1  ;;  %v712_v51 = vpop.permute.xlu1 %711 }
 0x20a   :  { %v1035_v63 = vpack.c.bf16 %v505_v57, %v504_v58  ;;  %v476_v0 = vadd.f32 %v475_v61, %v347_v53 }
 0x20b   :  { %v507_v2 = vmax.f32 %v481_v60, 0.0  ;;  %v550_v60 = vpop.permute.xlu0 %549 }
 0x20c   :  { %v506_v3 = vmax.f32 %v476_v0, 0.0  ;;  %v939_v4 = vpop.f32.mrb[4].mxu1  ;;  %1036 = vmatprep.subr.bf16.mxu1 %v1035_v63 }
 0x20d   :  { %v491_v5 = vadd.f32 %v939_v4, %v362_v62  ;;  %v485_v6 = vpop.f32.mrb[5].mxu1  ;;  %1038 = vmatpush3.bf16.msra.mxu1 %v1035_v63 }
 0x20e   :  { %v1039_v7 = vpack.c.bf16 %v507_v2, %v506_v3  ;;  %v486_v8 = vadd.f32 %v485_v6, %v357_v1  ;;  %v717_v2 = vpop.permute.xlu1 %716 }
 0x20f   :  { %v509_v9 = vmax.f32 %v491_v5, 0.0 }
 0x210   :  { %v508_v11 = vmax.f32 %v486_v8, 0.0  ;;  %v942_v12 = vpop.f32.mrb[6].mxu1  ;;  %1040 = vmatprep.subr.bf16.mxu1 %v1039_v7 }
 0x211   :  { %v501_v14 = vadd.f32 %v942_v12, %v372_v10  ;;  %v495_v15 = vpop.f32.mrb[7].mxu1  ;;  %1042 = vmatpush3.bf16.msra.mxu1 %v1039_v7  ;;  %v722_v12 = vpop.permute.xlu0 %721 }
 0x212   :  { %v1043_v16 = vpack.c.bf16 %v509_v9, %v508_v11  ;;  %v496_v17 = vadd.f32 %v495_v15, %v367_v13  ;;  %v727_v15 = vpop.permute.xlu1 %726 }
 0x213   :  { %v511_v18 = vmax.f32 %v501_v14, 0.0 }
 0x214   :  { %v510_v19 = vmax.f32 %v496_v17, 0.0  ;;  %1044 = vmatprep.subr.bf16.mxu1 %v1043_v16 }
 0x215   :  { %1046 = vmatpush3.bf16.msra.mxu1 %v1043_v16 }
 0x216   :  { %v1047_v20 = vpack.c.bf16 %v511_v18, %v510_v19  ;;  %v755_v18 = vlaneseq }
 0x218   :  { %1048 = vmatprep.subr.bf16.mxu1 %v1047_v20 }
 0x219   :  { %1050 = vmatpush3.bf16.msra.mxu1 %v1047_v20 }
 0x21c   :  { %960 = vmatmul.mubr.msk.f32.vlgmr.msra.gmra.mrb[8].mxu1 %vm374_vm2, %v68_v21  ;;  %v756_v21 = vshrl.u32 %v755_v18, 7 }
 0x21d   :  { %962 = vmatprep.mubr.msk.f32.mxu1 %vm374_vm2, %v69_v22 }
 0x220   :  { %963 = vmatmul.mubr.msk.f32.gmra.mrb[10].mxu1 %vm374_vm2, %v70_v23 }
 0x221   :  { %965 = vmatprep.mubr.msk.f32.mxu1 %vm374_vm2, %v71_v24  ;;  %v757_v24 = vsub.s32 0, %v756_v21 }
 0x224   :  { %966 = vmatmul.mubr.msk.f32.gmra.mrb[12].mxu1 %vm374_vm2, %v72_v25 }
 0x225   :  { %968 = vmatprep.mubr.msk.f32.mxu1 %vm374_vm2, %v73_v26  ;;  %v753_v26 = vpop.permute.xlu0 %752 }
 0x228   :  { %969 = vmatmul.mubr.msk.f32.gmra.mrb[14].mxu1 %vm374_vm2, %v74_v27 }
 0x2ef   :  { %v961_v37 = vpop.f32.mrb[8].mxu1 }
 0x2f0   :  { %v648_v39 = vadd.f32 %v961_v37, %v520_v29  ;;  %v642_v40 = vpop.f32.mrb[9].mxu1 }
 0x2f1   :  { %v643_v41 = vadd.f32 %v642_v40, %v515_v28  ;;  %v758_v28 = vrot.slane %v753_v26, %v757_v24 }
 0x2f2   :  { %v682_v42 = vmax.f32 %v648_v39, 0.0 }
 0x2f3   :  { %v681_v43 = vmax.f32 %v643_v41, 0.0  ;;  %v964_v44 = vpop.f32.mrb[10].mxu1 }
 0x2f4   :  { %v730_v46 = vmul.f32 %v697_v33, %v682_v42  ;;  %v658_v47 = vadd.f32 %v964_v44, %v530_v31  ;;  %v652_v48 = vpop.f32.mrb[11].mxu1 }
 0x2f5   :  { %v729_v49 = vmul.f32 %v692_v32, %v681_v43  ;;  %v653_v50 = vadd.f32 %v652_v48, %v525_v30 }
 0x2f6   :  { %v684_v53 = vmax.f32 %v658_v47, 0.0 }
 0x2f7   :  { %v737_v52 = vadd.f32 %v730_v46, %v729_v49  ;;  %v683_v54 = vmax.f32 %v653_v50, 0.0  ;;  %v967_v55 = vpop.f32.mrb[12].mxu1 }
 0x2f8   :  { %v668_v56 = vadd.f32 %v967_v55, %v540_v36  ;;  %v662_v57 = vpop.f32.mrb[13].mxu1  ;;  %v732_v61 = vmul.f32 %v707_v38, %v684_v53 }
 0x2f9   :  { %v731_v58 = vmul.f32 %v702_v35, %v683_v54  ;;  %v663_v59 = vadd.f32 %v662_v57, %v535_v34 }
 0x2fa   :  { %v686_v63 = vmax.f32 %v668_v56, 0.0 }
 0x2fb   :  { %v738_v62 = vadd.f32 %v737_v52, %v731_v58  ;;  %v685_v0 = vmax.f32 %v663_v59, 0.0  ;;  %v970_v1 = vpop.f32.mrb[14].mxu1 }
 0x2fc   :  { %v678_v3 = vadd.f32 %v970_v1, %v550_v60  ;;  %v672_v4 = vpop.f32.mrb[15].mxu1  ;;  %v734_v8 = vmul.f32 %v717_v2, %v686_v63 }
 0x2fd   :  { %v733_v5 = vmul.f32 %v712_v51, %v685_v0  ;;  %v739_v6 = vadd.f32 %v738_v62, %v732_v61  ;;  %v673_v7 = vadd.f32 %v672_v4, %v545_v45 }
 0x2fe   :  { %v688_v10 = vmax.f32 %v678_v3, 0.0 }
 0x2ff   :  { %v740_v9 = vadd.f32 %v739_v6, %v733_v5  ;;  %v687_v11 = vmax.f32 %v673_v7, 0.0 }
 0x300   :  { %v736_v16 = vmul.f32 %v727_v15, %v688_v10 }
 0x301   :  { %v735_v13 = vmul.f32 %v722_v12, %v687_v11  ;;  %v741_v14 = vadd.f32 %v740_v9, %v734_v8 }
 0x303   :  { %v742_v17 = vadd.f32 %v741_v14, %v735_v13 }
 0x305   :  { %v743_v19 = vadd.f32 %v742_v17, %v736_v16 }
 0x307   :  { %v744_v20 = vrot.slane %v743_v19, 4 }
 0x309   :  { %v745_v22 = vadd.f32 %v744_v20, %v743_v19 }
 0x30b   :  { %v746_v23 = vrot.slane %v745_v22, 2 }
 0x30d   :  { %v747_v25 = vadd.f32 %v746_v23, %v745_v22 }
 0x30f   :  { %v748_v27 = vrot.slane %v747_v25, 1 }
 0x311   :  { %v749_v29 = vadd.f32 %v748_v27, %v747_v25 }
 0x313   :  { %v759_v30 = vadd.f32 %v758_v28, %v749_v29 }
 0x315   :  { %760 = vst [vmem:[#allocation3] sm:$0x1] %v759_v30 }
 0x316   :  { %1066 = shalt.err (!%p1063_p4)
}
 0x317   :  { %s1067_s30 = scalar_lea.hbm %s1433_s9, 16 }
 0x318   :  { %p1068_p5 = scmp.ne.s32.totalorder %s1433_s9, %s1067_s30  ;;  %p1071_p6 = scmp.lt.u32.totalorder %s1067_s30, %s1433_s9 }
 0x31a   :  { %p1073_p7 = pnand %p1071_p6, %p1068_p5 }
 0x31c   :  { %1076 = shalt.err (!%p1073_p7)
}
 0x31d   :  { %770 = dma.vmem_to_hbm [thread:$0]  %s768_s27, 16, %s1433_s9, [#allocation4]  }
 0x31e   :  { %1077 = dma.done.wait [#allocation4], 16  }
 0x31f   :  { %1078 = vsyncadd [#allocation4], 4294967280 }
 0x320   :  { %774 = vsyncpa [#allocation4], 1 }

</bundles_post_ra>
